<compile_context>
chip_gen: v7x
topology: tpu7x:2x2x1
jax: 0.10.0
libtpu: 0.0.40
codegen_flags: <defaults>
</compile_context>

<pallas_src>
import jax
import jax.numpy as jnp
from jax.experimental import pallas as pl
from jax.experimental.pallas import tpu as pltpu


def _cdiv(a, b):
    return -(-a // b)


def _round_up(x, m):
    return _cdiv(x, m) * m


def _pick_tile(requested, n, align=128):
    """Clamp a tile to the problem, keep it `align`-aligned, and balance the blocks so
    edge padding stays small (no lcm blow-up, <= one tile of waste per axis)."""
    t = _round_up(min(requested, _round_up(n, align)), align)
    return _round_up(_cdiv(n, _cdiv(n, t)), align)


def _prep(x, rows, cols, dtype):
    """Cast and zero-pad a 2-D array to (rows, cols), skipping no-op work."""
    if x.dtype != dtype:
        x = x.astype(dtype)
    pr, pc = rows - x.shape[0], cols - x.shape[1]
    if pr or pc:
        x = jnp.pad(x, ((0, pr), (0, pc)))
    return x


# ----------------------------------------------------------------------------- kernels

def _gin_agg_kernel(eps_ref, adj_ref, hk_ref, hi_ref, b_ref, out_ref):
    """Reassociated path (Dout <= Din): out = (1+eps)*h + adj @ h + b, h = feat @ W.

    eps_ref : SMEM (1,)          f32
    adj_ref : VMEM (tm, tk)      agg_dtype  -- adjacency tile, adj[i, j] = w(j->i)
    hk_ref  : VMEM (tk, Dout_p)  agg_dtype  -- projected feats, K stream
    hi_ref  : VMEM (tm, Dout_p)  f32        -- projected feats, dst rows (const in k)
    b_ref   : VMEM (1, Dout_p)   f32
    out_ref : VMEM (tm, Dout_p)  f32        -- resident f32 accumulator across k
    """
    k = pl.program_id(1)

    @pl.when(k == 0)
    def _():
        out_ref[...] = (1.0 + eps_ref[0]) * hi_ref[...] + b_ref[...]

    # Dominant N^2 matmul: narrow-dtype operands straight to the MXU, f32 accumulate
    # directly into the resident output tile.
    out_ref[...] += jnp.dot(adj_ref[...], hk_ref[...],
                            preferred_element_type=jnp.float32)


def _gin_fused_kernel(eps_ref, adj_ref, fk_ref, fi_ref, w_ref, b_ref, out_ref, acc_ref):
    """Fused path (Dout > Din): acc = adj @ feat; out = ((1+eps)*feat + acc) @ W + b."""
    k = pl.program_id(1)

    @pl.when(k == 0)
    def _():
        acc_ref[...] = jnp.zeros_like(acc_ref)

    acc_ref[...] += jnp.dot(adj_ref[...], fk_ref[...],
                            preferred_element_type=jnp.float32)

    @pl.when(k == pl.num_programs(1) - 1)
    def _():
        rst = (1.0 + eps_ref[0]) * fi_ref[...] + acc_ref[...]
        out_ref[...] = (jnp.dot(rst, w_ref[...], preferred_element_type=jnp.float32)
                        + b_ref[...]).astype(out_ref.dtype)


# ----------------------------------------------------------------------------- wrapper

def gin_conv(adj, feat, w, b, eps, *, tm=512, tk=1024, agg_dtype=jnp.bfloat16):
    """GINConv forward: ((1 + eps) * feat + adj @ feat) @ W + b.

    adj[i, j] is the weight of edge j -> i (1.0 for an unweighted graph). The N^2
    aggregation matmul runs in `agg_dtype` (bf16 default: exact for 0/1 adjacency;
    node features are rounded to bf16 for that matmul only). Pass agg_dtype=float32
    for fully f32 aggregation. Destination term, Linear, bias and accumulation are
    always f32. Pre-cast adj to `agg_dtype` at graph build time to keep the cast
    off the hot path. Defaults target v6e/v7x; on v5e prefer tm=128-256, large tk.
    """
    N, Din = feat.shape
    Dout = w.shape[1]
    assert adj.shape == (N, N)
    assert w.shape[0] == Din and b.shape == (Dout,)

    f32 = jnp.float32
    tm = _pick_tile(tm, N)
    tk = _pick_tile(tk, N)
    np_m = _round_up(N, tm)        # destination-row padding
    np_k = _round_up(N, tk)        # source-column padding (independent per axis)
    dout_p = _round_up(Dout, 128)  # lane-dense output / W / bias
    din_p = _round_up(Din, 128)    # lane-dense K-stream / accumulator (fused path)

    adj_p = _prep(adj, np_m, np_k, agg_dtype)
    b_p = _prep(jnp.reshape(b, (1, Dout)), 1, dout_p, f32)
    eps_arr = jnp.asarray([eps], dtype=f32)

    grid = (np_m // tm, np_k // tk)
    asize = jnp.dtype(agg_dtype).itemsize
    reassociate = dout_p <= din_p

    if reassociate:
        # One-time O(N*Din*Dout) projection pre-pass (tiny next to the N^2 stream).
        h = jnp.dot(feat.astype(f32), w.astype(f32), preferred_element_type=f32)
        h_i = _prep(h, np_m, dout_p, f32)        # destination rows (DMA'd once per i)
        h_k = _prep(h, np_k, dout_p, agg_dtype)  # K stream (narrow dtype)

        footprint = (2 * tm * tk * asize         # adj stream (double-buffered)
                     + 2 * tk * dout_p * asize   # h K-stream
                     + 2 * tm * dout_p * 4       # h destination rows
                     + 2 * dout_p * 4            # bias
                     + 2 * tm * dout_p * 4)      # output tile (f32 accumulator)
        vmem_limit = max(min(footprint + (8 << 20), 48 << 20), 16 << 20)
        vmem_limit = int(max(vmem_limit, footprint + (2 << 20)))

        cost = pl.CostEstimate(
            flops=2 * np_m * np_k * dout_p + 3 * np_m * dout_p,
            transcendentals=0,
            bytes_accessed=int(adj_p.size * asize + grid[0] * h_k.size * asize
                               + h_i.size * 4 + np_m * dout_p * 4),
        )

        out_p = pl.pallas_call(
            _gin_agg_kernel,
            out_shape=jax.ShapeDtypeStruct((np_m, dout_p), f32),
            grid=grid,
            in_specs=[
                pl.BlockSpec(memory_space=pltpu.MemorySpace.SMEM),    # eps scalar
                pl.BlockSpec((tm, tk), lambda i, k: (i, k)),          # adj tile
                pl.BlockSpec((tk, dout_p), lambda i, k: (k, 0)),      # h (src, K stream)
                pl.BlockSpec((tm, dout_p), lambda i, k: (i, 0)),      # h (dst rows)
                pl.BlockSpec((1, dout_p), lambda i, k: (0, 0)),       # bias
            ],
            out_specs=pl.BlockSpec((tm, dout_p), lambda i, k: (i, 0)),
            compiler_params=pltpu.CompilerParams(
                dimension_semantics=("parallel", "arbitrary"),
                vmem_limit_bytes=vmem_limit,
            ),
            cost_estimate=cost,
        )(eps_arr, adj_p, h_k, h_i, b_p)
    else:
        f_i = _prep(feat, np_m, din_p, f32)       # destination rows (f32)
        f_k = _prep(feat, np_k, din_p, agg_dtype)  # K stream (narrow dtype)
        w_p = _prep(w, din_p, dout_p, f32)

        footprint = (2 * tm * tk * asize
                     + 2 * tk * din_p * asize
                     + 2 * tm * din_p * 4
                     + 2 * din_p * dout_p * 4
                     + 2 * dout_p * 4
                     + 2 * tm * dout_p * 4
                     + tm * din_p * 4)            # accumulator scratch
        vmem_limit = max(min(footprint + (8 << 20), 48 << 20), 16 << 20)
        vmem_limit = int(max(vmem_limit, footprint + (2 << 20)))

        cost = pl.CostEstimate(
            flops=2 * np_m * np_k * din_p + 2 * np_m * din_p * dout_p,
            transcendentals=0,
            bytes_accessed=int(adj_p.size * asize + grid[0] * f_k.size * asize
                               + f_i.size * 4 + w_p.size * 4 + np_m * dout_p * 4),
        )

        out_p = pl.pallas_call(
            _gin_fused_kernel,
            out_shape=jax.ShapeDtypeStruct((np_m, dout_p), f32),
            grid=grid,
            in_specs=[
                pl.BlockSpec(memory_space=pltpu.MemorySpace.SMEM),    # eps scalar
                pl.BlockSpec((tm, tk), lambda i, k: (i, k)),          # adj tile
                pl.BlockSpec((tk, din_p), lambda i, k: (k, 0)),       # feat (src, K stream)
                pl.BlockSpec((tm, din_p), lambda i, k: (i, 0)),       # feat (dst rows)
                pl.BlockSpec((din_p, dout_p), lambda i, k: (0, 0)),   # Linear weight
                pl.BlockSpec((1, dout_p), lambda i, k: (0, 0)),       # Linear bias
            ],
            out_specs=pl.BlockSpec((tm, dout_p), lambda i, k: (i, 0)),
            scratch_shapes=[pltpu.VMEM((tm, din_p), f32)],
            compiler_params=pltpu.CompilerParams(
                dimension_semantics=("parallel", "arbitrary"),
                vmem_limit_bytes=vmem_limit,
            ),
            cost_estimate=cost,
        )(eps_arr, adj_p, f_k, f_i, w_p, b_p)

    return out_p[:N, :Dout]


# ----------------------------------------------------------------------------- reference

def gin_conv_ref(adj, feat, w, b, eps):
    hp = jax.lax.Precision.HIGHEST
    f32 = jnp.float32
    neigh = jnp.dot(adj.astype(f32), feat.astype(f32), precision=hp)
    rst = (1.0 + eps) * feat.astype(f32) + neigh
    return jnp.dot(rst, w.astype(f32), precision=hp) + b.astype(f32)


def _make_problem(key, n, din, dout, adj_dtype=jnp.bfloat16):
    k_feat, k_adj, k_w, k_b = jax.random.split(key, 4)
    feat = jax.random.normal(k_feat, (n, din), dtype=jnp.float32)
    # Random sparse directed graph; adj[i, j] = 1 means edge j -> i. Built directly in
    # the aggregation dtype ("graph build time") so the wrapper does no cast pass.
    adj = jax.random.bernoulli(k_adj, p=0.1, shape=(n, n))
    adj = (adj & (~jnp.eye(n, dtype=bool))).astype(adj_dtype)   # no self-loops
    # Deterministic Linear(din, dout) params (synthetic init, not a checkpoint).
    bound = 1.0 / (din ** 0.5)
    w = jax.random.uniform(k_w, (din, dout), minval=-bound, maxval=bound, dtype=jnp.float32)
    b = jax.random.uniform(k_b, (dout,), minval=-bound, maxval=bound, dtype=jnp.float32)
    return adj, feat, w, b


def _check(name, out, ref, rel_tol):
    err = float(jnp.max(jnp.abs(out - ref)))
    scale = max(float(jnp.max(jnp.abs(ref))), 1.0)
    assert err <= rel_tol * scale, f"{name}: max_err={err:.5f} scale={scale:.3f}"


if __name__ == "__main__":
    # Case 1: reassociated path (Dout <= Din), f32 aggregation, 64 nodes, D=32.
    adj, feat, w, b = _make_problem(jax.random.PRNGKey(0), 64, 32, 32,
                                    adj_dtype=jnp.float32)
    out = jax.block_until_ready(gin_conv(adj, feat, w, b, 0.0, agg_dtype=jnp.float32))
    assert out.shape == (64, 32)
    _check("case1", out, gin_conv_ref(adj, feat, w, b, 0.0), 2e-2)

    # Case 2: reassociated path, default bf16 aggregation, multi-step K reduction,
    # non-multiple-of-128 Dout, nonzero eps (256 nodes, Din=64, Dout=48).
    adj2, feat2, w2, b2 = _make_problem(jax.random.PRNGKey(1), 256, 64, 48)
    out2 = jax.block_until_ready(gin_conv(adj2, feat2, w2, b2, 0.3, tm=128, tk=128))
    assert out2.shape == (256, 48)
    _check("case2", out2, gin_conv_ref(adj2, feat2, w2, b2, 0.3), 3e-2)

    # Case 3: fused path (Dout > Din), f32 aggregation, ragged N (96 nodes, 32 -> 160).
    adj3, feat3, w3, b3 = _make_problem(jax.random.PRNGKey(2), 96, 32, 160,
                                        adj_dtype=jnp.float32)
    out3 = jax.block_until_ready(
        gin_conv(adj3, feat3, w3, b3, 0.1, tm=128, tk=128, agg_dtype=jnp.float32))
    assert out3.shape == (96, 160)
    _check("case3", out3, gin_conv_ref(adj3, feat3, w3, b3, 0.1), 2e-2)

    # Case 4: fused path with default bf16 aggregation and default (clamped) tiles.
    adj4, feat4, w4, b4 = _make_problem(jax.random.PRNGKey(3), 96, 32, 160)
    out4 = jax.block_until_ready(gin_conv(adj4, feat4, w4, b4, 0.1))
    assert out4.shape == (96, 160)
    _check("case4", out4, gin_conv_ref(adj4, feat4, w4, b4, 0.1), 3e-2)

    print("KERNEL_OK")
</pallas_src>

<mosaic_0001>
module attributes {stable_mosaic.version = 11 : i64} {
  func.func @_gin_agg_kernel(%arg0: i32, %arg1: i32, %arg2: memref<1xf32, #tpu.memory_space<smem>>, %arg3: memref<128x128xf32, #tpu.memory_space<vmem>>, %arg4: memref<128x128xf32, #tpu.memory_space<vmem>>, %arg5: memref<128x128xf32, #tpu.memory_space<vmem>>, %arg6: memref<1x128xf32, #tpu.memory_space<vmem>>, %arg7: memref<128x128xf32, #tpu.memory_space<vmem>>) attributes {dimension_semantics = [#tpu.dimension_semantics<parallel>, #tpu.dimension_semantics<arbitrary>], iteration_bounds = array<i64: 1, 1>, scalar_prefetch = 0 : i64, scratch_operands = 0 : i64, tpu.core_type = #tpu.core_type<tc>, window_params = [{transform_indices = @transform_0, window_bounds = array<i64: 1>}, {transform_indices = @transform_1, window_bounds = array<i64: 128, 128>}, {transform_indices = @transform_2, window_bounds = array<i64: 128, 128>}, {transform_indices = @transform_3, window_bounds = array<i64: 128, 128>}, {pipeline_mode = #tpu.pipeline_mode<synchronous>, transform_indices = @transform_4, window_bounds = array<i64: 1, 128>}, {transform_indices = @transform_5, window_bounds = array<i64: 128, 128>}]} {
    %c0_i32 = arith.constant 0 : i32
    %0 = arith.cmpi eq, %arg1, %c0_i32 : i32
    %1 = arith.extui %0 : i1 to i32
    %c0_i32_0 = arith.constant 0 : i32
    %2 = arith.cmpi ne, %1, %c0_i32_0 : i32
    scf.if %2 {
      %c0_8 = arith.constant 0 : index
      %9 = memref.load %arg2[%c0_8] : memref<1xf32, #tpu.memory_space<smem>>
      %cst_9 = arith.constant 1.000000e+00 : f32
      %10 = arith.addf %cst_9, %9 : f32
      %c0_10 = arith.constant 0 : index
      %c0_11 = arith.constant 0 : index
      %11 = vector.load %arg5[%c0_10, %c0_11] : memref<128x128xf32, #tpu.memory_space<vmem>>, vector<128x128xf32>
      %12 = vector.broadcast %10 : f32 to vector<128x128xf32>
      %13 = arith.mulf %12, %11 : vector<128x128xf32>
      %c0_12 = arith.constant 0 : index
      %c0_13 = arith.constant 0 : index
      %14 = vector.load %arg6[%c0_12, %c0_13] : memref<1x128xf32, #tpu.memory_space<vmem>>, vector<1x128xf32>
      %15 = vector.broadcast %14 : vector<1x128xf32> to vector<128x128xf32>
      %16 = arith.addf %13, %15 : vector<128x128xf32>
      %c0_14 = arith.constant 0 : index
      %c0_15 = arith.constant 0 : index
      %17 = vector.load %arg7[%c0_14, %c0_15] : memref<128x128xf32, #tpu.memory_space<vmem>>, vector<128x128xf32>
      tpu.vector_store %arg7[%c0_14, %c0_15], %16 {strides = array<i32>} : memref<128x128xf32, #tpu.memory_space<vmem>>, vector<128x128xf32>,
    } else {
    }
    %c0 = arith.constant 0 : index
    %c0_1 = arith.constant 0 : index
    %3 = vector.load %arg7[%c0, %c0_1] : memref<128x128xf32, #tpu.memory_space<vmem>>, vector<128x128xf32>
    %c0_2 = arith.constant 0 : index
    %c0_3 = arith.constant 0 : index
    %4 = vector.load %arg3[%c0_2, %c0_3] : memref<128x128xf32, #tpu.memory_space<vmem>>, vector<128x128xf32>
    %c0_4 = arith.constant 0 : index
    %c0_5 = arith.constant 0 : index
    %5 = vector.load %arg4[%c0_4, %c0_5] : memref<128x128xf32, #tpu.memory_space<vmem>>, vector<128x128xf32>
    %cst = arith.constant dense<0.000000e+00> : vector<128x128xf32>
    %6 = tpu.matmul %4, %5, %cst {dimension_numbers = #tpu.dot_dimension_numbers<[1], [0], [0], [1], [0, 0, 1, 1], [], []>} : vector<128x128xf32>, vector<128x128xf32>, vector<128x128xf32> -> vector<128x128xf32>
    %7 = arith.addf %3, %6 : vector<128x128xf32>
    %c0_6 = arith.constant 0 : index
    %c0_7 = arith.constant 0 : index
    %8 = vector.load %arg7[%c0_6, %c0_7] : memref<128x128xf32, #tpu.memory_space<vmem>>, vector<128x128xf32>
    tpu.vector_store %arg7[%c0_6, %c0_7], %7 {strides = array<i32>} : memref<128x128xf32, #tpu.memory_space<vmem>>, vector<128x128xf32>,
    return
  }
  func.func @transform_0(%arg0: i32, %arg1: i32) -> i32 {
    %c0_i32 = arith.constant 0 : i32
    %c0_i32_0 = arith.constant 0 : i32
    return %c0_i32 : i32
  }
  func.func @transform_1(%arg0: i32, %arg1: i32) -> (i32, i32) {
    %c0_i32 = arith.constant 0 : i32
    return %arg0, %arg1 : i32, i32
  }
  func.func @transform_2(%arg0: i32, %arg1: i32) -> (i32, i32) {
    %c0_i32 = arith.constant 0 : i32
    %c0_i32_0 = arith.constant 0 : i32
    return %arg1, %c0_i32 : i32, i32
  }
  func.func @transform_3(%arg0: i32, %arg1: i32) -> (i32, i32) {
    %c0_i32 = arith.constant 0 : i32
    %c0_i32_0 = arith.constant 0 : i32
    return %arg0, %c0_i32 : i32, i32
  }
  func.func @transform_4(%arg0: i32, %arg1: i32) -> (i32, i32) {
    %c0_i32 = arith.constant 0 : i32
    %c0_i32_0 = arith.constant 0 : i32
    %c0_i32_1 = arith.constant 0 : i32
    return %c0_i32, %c0_i32_0 : i32, i32
  }
  func.func @transform_5(%arg0: i32, %arg1: i32) -> (i32, i32) {
    %c0_i32 = arith.constant 0 : i32
    %c0_i32_0 = arith.constant 0 : i32
    return %arg0, %c0_i32 : i32, i32
  }
}

</mosaic_0001>

<bundles_post_ra>
// kernel: tpu_custom_call.1
= control target key start
LH: loop header
LB: loop body
LE: loop exit
PB: predicated region body
PF: predicated region fallthrough
CT: control target
= control target key end

     0   :  { %11 = vsyncpa [#allocation4], 0  ;;  %s766_s0 = inlined_call_operand.<no memory space> [shape: f32[1], index: 0, kind: input, shape index: {}]   ;;  %s767_s1 = inlined_call_operand.hbm [shape: f32[128,128], index: 1, kind: input, shape index: {}]   ;;  %s768_s2 = inlined_call_operand.hbm [shape: f32[128,128], index: 2, kind: input, shape index: {}]   ;;  %s769_s3 = inlined_call_operand.hbm [shape: f32[128,128], index: 3, kind: input, shape index: {}]   ;;  %s770_s4 = inlined_call_operand.vmem [shape: f32[1,128], index: 4, kind: input, shape index: {}]   ;;  %s771_s5 = inlined_call_operand.hbm [shape: f32[128,128], index: 5, kind: output, shape index: {}]  }
   0x1   :  { %12 = vsyncpa [#allocation7], 0 }
   0x2   :  { %13 = vsyncpa [#allocation5], 0  ;;  %s621_s18 = smov [#allocation6]   ;;  %s622_s20 = smov [#allocation3]  }
   0x3   :  { %s33_s19 = sshll.u32 %s621_s18, 4  ;;  %s21_s21 = sshll.u32 %s622_s20, 4  ;;  %s34_s19 = int_to_ptr.vmem [resolvable:$true] %s33_s19  ;;  %s657_s21 = int_to_ptr.vmem [resolvable:$true] %s21_s21 }
   0x4   :  { %s527_s24 = scalar_lea.hbm %s768_s2, 2048 }
   0x5   :  { %p528_p0 = scmp.ne.s32.totalorder %s768_s2, %s527_s24  ;;  %p531_p1 = scmp.lt.u32.totalorder %s527_s24, %s768_s2 }
   0x7   :  { %p533_p2 = pnand %p531_p1, %p528_p0 }
   0x9   :  { %536 = shalt.err (!%p533_p2)
}
   0xa   :  { %s537_s29 = scalar_lea.vmem %s34_s19, 2048  ;;  %p542_p4 = scmp.lt.s32.totalorder %s34_s19, %s34_s19 }
   0xb   :  { %p538_p3 = scmp.ne.s32.totalorder %s34_s19, %s537_s29  ;;  %p543_p5 = scmp.lt.s32.totalorder %s537_s29, %s537_s29 }
   0xd   :  { %p544_p6 = por %p543_p5, %p542_p4 }
   0xf   :  { %p545_p7 = pnand %p544_p6, %p538_p3 }
  0x11   :  { %548 = shalt.err (!%p545_p7)
}
  0x12   :  { %s623_s30 = smov 128   ;;  %s624_s6 = smov 8  }
  0x13   :  { %39 = dma.hbm_to_vmem [thread:$0]  %s768_s2, 2048, %s34_s19, [#allocation7], %s623_s30, %s623_s30, %s624_s6  }
  0x14   :  { %s549_s11 = scalar_lea.hbm %s767_s1, 2048 }
  0x15   :  { %p550_p8 = scmp.ne.s32.totalorder %s767_s1, %s549_s11  ;;  %p553_p9 = scmp.lt.u32.totalorder %s549_s11, %s767_s1 }
  0x17   :  { %p555_p10 = pnand %p553_p9, %p550_p8 }
  0x19   :  { %558 = shalt.err (!%p555_p10)
}
  0x1a   :  { %s559_s16 = scalar_lea.vmem %s657_s21, 2048  ;;  %p564_p12 = scmp.lt.s32.totalorder %s657_s21, %s657_s21 }
  0x1b   :  { %p560_p11 = scmp.ne.s32.totalorder %s657_s21, %s559_s16  ;;  %p565_p13 = scmp.lt.s32.totalorder %s559_s16, %s559_s16 }
  0x1d   :  { %p566_p0 = por %p565_p13, %p564_p12 }
  0x1f   :  { %p567_p1 = pnand %p566_p0, %p560_p11 }
  0x21   :  { %570 = shalt.err (!%p567_p1)
}
  0x22   :  { %27 = dma.hbm_to_vmem [thread:$0]  %s767_s1, 2048, %s657_s21, [#allocation4], %s623_s30, %s623_s30, %s624_s6  }
  0x23   :  { %s625_s18 = smov [#allocation8]   ;;  %s571_s23 = scalar_lea.hbm %s769_s3, 2048 }
  0x24   :  { %s45_s19 = sshll.u32 %s625_s18, 4  ;;  %p572_p2 = scmp.ne.s32.totalorder %s769_s3, %s571_s23  ;;  %s46_s19 = int_to_ptr.vmem [resolvable:$true] %s45_s19 }
  0x25   :  { %p575_p3 = scmp.lt.u32.totalorder %s571_s23, %s769_s3 }
  0x27   :  { %p577_p4 = pnand %p575_p3, %p572_p2 }
  0x29   :  { %580 = shalt.err (!%p577_p4)
}
  0x2a   :  { %s581_s28 = scalar_lea.vmem %s46_s19, 2048  ;;  %p586_p6 = scmp.lt.s32.totalorder %s46_s19, %s46_s19 }
  0x2b   :  { %p582_p5 = scmp.ne.s32.totalorder %s46_s19, %s581_s28  ;;  %p587_p7 = scmp.lt.s32.totalorder %s581_s28, %s581_s28 }
  0x2d   :  { %p588_p8 = por %p587_p7, %p586_p6 }
  0x2f   :  { %p589_p9 = pnand %p588_p8, %p582_p5 }
  0x31   :  { %592 = shalt.err (!%p589_p9)
}
  0x32   :  { %51 = dma.hbm_to_vmem [thread:$0]  %s769_s3, 2048, %s46_s19, [#allocation7], %s623_s30, %s623_s30, %s624_s6  }
  0x33   :  { %615 = dma.done.wait [#allocation4], 2048  }
  0x34   :  { %616 = vsyncadd [#allocation4], 4294965248 }
  0x35   :  { %617 = dma.done.wait [#allocation7], 4096  }
  0x36   :  { %618 = vsyncadd [#allocation7], 4294963200  ;;  %v173_v0 = vld [vmem:[#allocation6] sm:$0xff]  ;;  %v174_v1 = vld [vmem:[#allocation6 + $0x8] sm:$0xff]  ;;  %s68_s7 = sadd.f32 1.0, %s766_s0  ;;  %s626_s0 = smov [#allocation9]  }
  0x37   :  { %v175_v2 = vld [vmem:[#allocation6 + $0x10] sm:$0xff]  ;;  %v473_v3 = vpack.c.bf16 %v174_v1, %v173_v0  ;;  %v176_v4 = vld [vmem:[#allocation6 + $0x18] sm:$0xff]  ;;  %v177_v6 = vld [vmem:[#allocation6 + $0x20] sm:$0xff] }
  0x38   :  { %v477_v5 = vpack.c.bf16 %v176_v4, %v175_v2  ;;  %v178_v7 = vld [vmem:[#allocation6 + $0x28] sm:$0xff]  ;;  %v157_v9 = vld [vmem:[#allocation3] sm:$0xff]  ;;  %v179_v11 = vld [vmem:[#allocation6 + $0x30] sm:$0xff]  ;;  %v712_v41 = vstv %s68_s7 }
  0x39   :  { %474 = vmatprep.subr.bf16.mxu0 %v473_v3  ;;  %505 = vmatprep.subr.bf16.mxu1 %v473_v3  ;;  %v481_v8 = vpack.c.bf16 %v178_v7, %v177_v6  ;;  %v165_v10 = vld [vmem:[#allocation3 + $0x40] sm:$0xff]  ;;  %v180_v12 = vld [vmem:[#allocation6 + $0x38] sm:$0xff]  ;;  %v182_v15 = vld [vmem:[#allocation6 + $0x48] sm:$0xff] }
  0x3a   :  { %476 = vmatpush3.bf16.msra.mxu0 %v473_v3  ;;  %513 = vmatpush3.bf16.msra.mxu1 %v473_v3  ;;  %v485_v13 = vpack.c.bf16 %v180_v12, %v179_v11  ;;  %v181_v14 = vld [vmem:[#allocation6 + $0x40] sm:$0xff]  ;;  %v183_v17 = vld [vmem:[#allocation6 + $0x50] sm:$0xff]  ;;  %v184_v18 = vld [vmem:[#allocation6 + $0x58] sm:$0xff] }
  0x3b   :  { %478 = vmatprep.subr.bf16.mxu0 %v477_v5  ;;  %506 = vmatprep.subr.bf16.mxu1 %v477_v5  ;;  %v489_v16 = vpack.c.bf16 %v182_v15, %v181_v14  ;;  %v493_v19 = vpack.c.bf16 %v184_v18, %v183_v17  ;;  %v185_v20 = vld [vmem:[#allocation6 + $0x60] sm:$0xff]  ;;  %v186_v21 = vld [vmem:[#allocation6 + $0x68] sm:$0xff]  ;;  %v187_v23 = vld [vmem:[#allocation6 + $0x70] sm:$0xff] }
  0x3c   :  { %449 = vmatprep.mubr.f32.mxu0 %v157_v9  ;;  %461 = vmatprep.mubr.f32.mxu1 %v165_v10  ;;  %v497_v22 = vpack.c.bf16 %v186_v21, %v185_v20  ;;  %v188_v24 = vld [vmem:[#allocation6 + $0x78] sm:$0xff]  ;;  %v158_v26 = vld [vmem:[#allocation3 + $0x8] sm:$0xff]  ;;  %v159_v28 = vld [vmem:[#allocation3 + $0x10] sm:$0xff] }
  0x3d   :  { %v501_v25 = vpack.c.bf16 %v188_v24, %v187_v23  ;;  %v166_v27 = vld [vmem:[#allocation3 + $0x48] sm:$0xff]  ;;  %v167_v29 = vld [vmem:[#allocation3 + $0x50] sm:$0xff]  ;;  %v160_v30 = vld [vmem:[#allocation3 + $0x18] sm:$0xff] }
  0x3e   :  { %480 = vmatpush3.bf16.msra.mxu0 %v477_v5  ;;  %514 = vmatpush3.bf16.msra.mxu1 %v477_v5  ;;  %v168_v31 = vld [vmem:[#allocation3 + $0x58] sm:$0xff]  ;;  %v161_v32 = vld [vmem:[#allocation3 + $0x20] sm:$0xff]  ;;  %v162_v34 = vld [vmem:[#allocation3 + $0x28] sm:$0xff] }
  0x3f   :  { %482 = vmatprep.subr.bf16.mxu0 %v481_v8  ;;  %507 = vmatprep.subr.bf16.mxu1 %v481_v8  ;;  %v169_v33 = vld [vmem:[#allocation3 + $0x60] sm:$0xff]  ;;  %v170_v35 = vld [vmem:[#allocation3 + $0x68] sm:$0xff]  ;;  %v163_v36 = vld [vmem:[#allocation3 + $0x30] sm:$0xff] }
  0x40   :  { %v171_v37 = vld [vmem:[#allocation3 + $0x70] sm:$0xff]  ;;  %v164_v38 = vld [vmem:[#allocation3 + $0x38] sm:$0xff]  ;;  %v70_v40 = vld [vmem:[#allocation8 + $0x8] sm:$0xff] }
  0x41   :  { %v172_v39 = vld [vmem:[#allocation3 + $0x78] sm:$0xff]  ;;  %v78_v42 = vld [vmem:[#allocation8 + $0x48] sm:$0xff]  ;;  %v69_v43 = vld [vmem:[#allocation8] sm:$0xff]  ;;  %v87_v45 = vmul.f32 %v712_v41, %v70_v40 }
  0x42   :  { %484 = vmatpush3.bf16.msra.mxu0 %v481_v8  ;;  %515 = vmatpush3.bf16.msra.mxu1 %v481_v8  ;;  %v77_v44 = vld [vmem:[#allocation8 + $0x40] sm:$0xff]  ;;  %v95_v46 = vmul.f32 %v712_v41, %v78_v42  ;;  %v86_v48 = vmul.f32 %v712_v41, %v69_v43  ;;  %v72_v50 = vld [vmem:[#allocation8 + $0x18] sm:$0xff]  ;;  %v71_v52 = vld [vmem:[#allocation8 + $0x10] sm:$0xff] }
  0x43   :  { %486 = vmatprep.subr.bf16.mxu0 %v485_v13  ;;  %508 = vmatprep.subr.bf16.mxu1 %v485_v13  ;;  %v719_v47 = vld [vmem:[%s770_s4] ss:$0 sm:$0xff]  ;;  %v94_v49 = vmul.f32 %v712_v41, %v77_v44  ;;  %v80_v51 = vld [vmem:[#allocation8 + $0x58] sm:$0xff]  ;;  %v79_v53 = vld [vmem:[#allocation8 + $0x50] sm:$0xff]  ;;  %v89_v57 = vmul.f32 %v712_v41, %v72_v50  ;;  %v88_v0 = vmul.f32 %v712_v41, %v71_v52  ;;  %s371_s4 = sshll.u32 %s626_s0, 4  ;;  %s372_s4 = int_to_ptr.vmem [resolvable:$true] %s371_s4 }
  0x44   :  { %v74_v54 = vld [vmem:[#allocation8 + $0x28] sm:$0xff]  ;;  %v110_v55 = vadd.f32 %v719_v47, %v87_v45  ;;  %v118_v56 = vadd.f32 %v719_v47, %v95_v46  ;;  %v97_v58 = vmul.f32 %v712_v41, %v80_v51  ;;  %v73_v60 = vld [vmem:[#allocation8 + $0x20] sm:$0xff]  ;;  %v109_v62 = vadd.f32 %v719_v47, %v86_v48  ;;  %v76_v18 = vld [vmem:[#allocation8 + $0x38] sm:$0xff]  ;;  %s593_s10 = scalar_lea.vmem %s372_s4, 2048  ;;  %p598_p11 = scmp.lt.s32.totalorder %s372_s4, %s372_s4 }
  0x45   :  { %v82_v59 = vld [vmem:[#allocation8 + $0x68] sm:$0xff]  ;;  %v81_v61 = vld [vmem:[#allocation8 + $0x60] sm:$0xff]  ;;  %v117_v63 = vadd.f32 %v719_v47, %v94_v49  ;;  %v96_v1 = vmul.f32 %v712_v41, %v79_v53  ;;  %v91_v4 = vmul.f32 %v712_v41, %v74_v54  ;;  %v90_v6 = vmul.f32 %v712_v41, %v73_v60  ;;  %v75_v20 = vld [vmem:[#allocation8 + $0x30] sm:$0xff]  ;;  %p594_p10 = scmp.ne.s32.totalorder %s372_s4, %s593_s10  ;;  %p599_p12 = scmp.lt.s32.totalorder %s593_s10, %s593_s10 }
  0x46   :  { %488 = vmatpush3.bf16.msra.mxu0 %v485_v13  ;;  %516 = vmatpush3.bf16.msra.mxu1 %v485_v13  ;;  %v99_v5 = vmul.f32 %v712_v41, %v82_v59  ;;  %v98_v7 = vmul.f32 %v712_v41, %v81_v61  ;;  %v112_v12 = vadd.f32 %v719_v47, %v89_v57  ;;  %v83_v21 = vld [vmem:[#allocation8 + $0x70] sm:$0xff] }
  0x47   :  { %490 = vmatprep.subr.bf16.mxu0 %v489_v16  ;;  %509 = vmatprep.subr.bf16.mxu1 %v489_v16  ;;  %v120_v13 = vadd.f32 %v719_v47, %v97_v58  ;;  %v119_v17 = vadd.f32 %v719_v47, %v96_v1  ;;  %v114_v24 = vadd.f32 %v719_v47, %v91_v4  ;;  %p600_p13 = por %p599_p12, %p598_p11 }
  0x49   :  { %p601_p0 = pnand %p600_p13, %p594_p10 }
  0x4a   :  { %492 = vmatpush3.bf16.msra.mxu0 %v489_v16  ;;  %517 = vmatpush3.bf16.msra.mxu1 %v489_v16  ;;  %v111_v16 = vadd.f32 %v719_v47, %v88_v0 }
  0x4b   :  { %494 = vmatprep.subr.bf16.mxu0 %v493_v19  ;;  %510 = vmatprep.subr.bf16.mxu1 %v493_v19 }
  0x4e   :  { %496 = vmatpush3.bf16.msra.mxu0 %v493_v19  ;;  %518 = vmatpush3.bf16.msra.mxu1 %v493_v19  ;;  %v84_v19 = vld [vmem:[#allocation8 + $0x78] sm:$0xff] }
  0x4f   :  { %498 = vmatprep.subr.bf16.mxu0 %v497_v22  ;;  %511 = vmatprep.subr.bf16.mxu1 %v497_v22 }
  0x52   :  { %500 = vmatpush3.bf16.msra.mxu0 %v497_v22  ;;  %519 = vmatpush3.bf16.msra.mxu1 %v497_v22 }
  0x53   :  { %502 = vmatprep.subr.bf16.mxu0 %v501_v25  ;;  %512 = vmatprep.subr.bf16.mxu1 %v501_v25 }
  0x56   :  { %504 = vmatpush3.bf16.msra.mxu0 %v501_v25  ;;  %520 = vmatpush3.bf16.msra.mxu1 %v501_v25  ;;  %v122_v25 = vadd.f32 %v719_v47, %v99_v5 }
  0x59   :  { %450 = vmatmul.mubr.f32.vlgmr.msra.gmra.mrb[0].mxu0 %v158_v26  ;;  %462 = vmatmul.mubr.f32.vlgmr.msra.gmra.mrb[0].mxu1 %v166_v27  ;;  %v113_v26 = vadd.f32 %v719_v47, %v90_v6  ;;  %v121_v27 = vadd.f32 %v719_v47, %v98_v7 }
  0x5a   :  { %452 = vmatprep.mubr.f32.mxu0 %v159_v28  ;;  %464 = vmatprep.mubr.f32.mxu1 %v167_v29 }
  0x5d   :  { %453 = vmatmul.mubr.f32.gmra.mrb[2].mxu0 %v160_v30  ;;  %465 = vmatmul.mubr.f32.gmra.mrb[2].mxu1 %v168_v31 }
  0x5e   :  { %455 = vmatprep.mubr.f32.mxu0 %v161_v32  ;;  %467 = vmatprep.mubr.f32.mxu1 %v169_v33  ;;  %v93_v32 = vmul.f32 %v712_v41, %v76_v18  ;;  %v101_v33 = vmul.f32 %v712_v41, %v84_v19 }
  0x60   :  { %v116_v45 = vadd.f32 %v719_v47, %v93_v32  ;;  %v124_v46 = vadd.f32 %v719_v47, %v101_v33 }
  0x61   :  { %456 = vmatmul.mubr.f32.gmra.mrb[4].mxu0 %v162_v34  ;;  %468 = vmatmul.mubr.f32.gmra.mrb[4].mxu1 %v170_v35 }
  0x62   :  { %458 = vmatprep.mubr.f32.mxu0 %v163_v36  ;;  %470 = vmatprep.mubr.f32.mxu1 %v171_v37  ;;  %v92_v36 = vmul.f32 %v712_v41, %v75_v20  ;;  %v100_v37 = vmul.f32 %v712_v41, %v83_v21 }
  0x64   :  { %v115_v50 = vadd.f32 %v719_v47, %v92_v36  ;;  %v123_v41 = vadd.f32 %v719_v47, %v100_v37 }
  0x65   :  { %459 = vmatmul.mubr.f32.gmra.mrb[6].mxu0 %v164_v38  ;;  %471 = vmatmul.mubr.f32.gmra.mrb[6].mxu1 %v172_v39 }
 0x12c   :  { %v451_v2 = vpop.f32.mrb[0].mxu0  ;;  %v463_v3 = vpop.f32.mrb[0].mxu1 }
 0x12d   :  { %v335_v8 = vadd.f32 %v451_v2, %v110_v55  ;;  %v343_v9 = vadd.f32 %v463_v3, %v118_v56  ;;  %v255_v10 = vpop.f32.mrb[1].mxu0  ;;  %v295_v11 = vpop.f32.mrb[1].mxu1 }
 0x12e   :  { %v334_v14 = vadd.f32 %v255_v10, %v109_v62  ;;  %v342_v15 = vadd.f32 %v295_v11, %v117_v63 }
 0x12f   :  { %351 = vst [vmem:[#allocation9 + $0x8] sm:$0xff] %v335_v8  ;;  %359 = vst [vmem:[#allocation9 + $0x48] sm:$0xff] %v343_v9 }
 0x130   :  { %350 = vst [vmem:[#allocation9] sm:$0xff] %v334_v14  ;;  %358 = vst [vmem:[#allocation9 + $0x40] sm:$0xff] %v342_v15  ;;  %v454_v22 = vpop.f32.mrb[2].mxu0  ;;  %v466_v23 = vpop.f32.mrb[2].mxu1 }
 0x131   :  { %v337_v28 = vadd.f32 %v454_v22, %v112_v12  ;;  %v345_v29 = vadd.f32 %v466_v23, %v120_v13  ;;  %v265_v30 = vpop.f32.mrb[3].mxu0  ;;  %v305_v31 = vpop.f32.mrb[3].mxu1 }
 0x132   :  { %v336_v34 = vadd.f32 %v265_v30, %v111_v16  ;;  %v344_v35 = vadd.f32 %v305_v31, %v119_v17 }
 0x133   :  { %353 = vst [vmem:[#allocation9 + $0x18] sm:$0xff] %v337_v28  ;;  %361 = vst [vmem:[#allocation9 + $0x58] sm:$0xff] %v345_v29 }
 0x134   :  { %352 = vst [vmem:[#allocation9 + $0x10] sm:$0xff] %v336_v34  ;;  %360 = vst [vmem:[#allocation9 + $0x50] sm:$0xff] %v344_v35  ;;  %v457_v38 = vpop.f32.mrb[4].mxu0  ;;  %v469_v39 = vpop.f32.mrb[4].mxu1 }
 0x135   :  { %v339_v40 = vadd.f32 %v457_v38, %v114_v24  ;;  %v347_v42 = vadd.f32 %v469_v39, %v122_v25  ;;  %v275_v43 = vpop.f32.mrb[5].mxu0  ;;  %v315_v44 = vpop.f32.mrb[5].mxu1 }
 0x136   :  { %v338_v48 = vadd.f32 %v275_v43, %v113_v26  ;;  %v346_v49 = vadd.f32 %v315_v44, %v121_v27 }
 0x137   :  { %355 = vst [vmem:[#allocation9 + $0x28] sm:$0xff] %v339_v40  ;;  %363 = vst [vmem:[#allocation9 + $0x68] sm:$0xff] %v347_v42 }
 0x138   :  { %354 = vst [vmem:[#allocation9 + $0x20] sm:$0xff] %v338_v48  ;;  %362 = vst [vmem:[#allocation9 + $0x60] sm:$0xff] %v346_v49  ;;  %v460_v51 = vpop.f32.mrb[6].mxu0  ;;  %v472_v52 = vpop.f32.mrb[6].mxu1 }
 0x139   :  { %v341_v53 = vadd.f32 %v460_v51, %v116_v45  ;;  %v349_v54 = vadd.f32 %v472_v52, %v124_v46  ;;  %v285_v55 = vpop.f32.mrb[7].mxu0  ;;  %v325_v56 = vpop.f32.mrb[7].mxu1 }
 0x13a   :  { %v340_v57 = vadd.f32 %v285_v55, %v115_v50  ;;  %v348_v58 = vadd.f32 %v325_v56, %v123_v41 }
 0x13b   :  { %357 = vst [vmem:[#allocation9 + $0x38] sm:$0xff] %v341_v53  ;;  %365 = vst [vmem:[#allocation9 + $0x78] sm:$0xff] %v349_v54 }
 0x13c   :  { %356 = vst [vmem:[#allocation9 + $0x30] sm:$0xff] %v340_v57  ;;  %364 = vst [vmem:[#allocation9 + $0x70] sm:$0xff] %v348_v58 }
 0x13d   :  { %604 = shalt.err (!%p601_p0)
}
 0x13e   :  { %s605_s13 = scalar_lea.hbm %s771_s5, 2048 }
 0x13f   :  { %p606_p1 = scmp.ne.s32.totalorder %s771_s5, %s605_s13  ;;  %p609_p2 = scmp.lt.u32.totalorder %s605_s13, %s771_s5 }
 0x141   :  { %p611_p3 = pnand %p609_p2, %p606_p1 }
 0x143   :  { %614 = shalt.err (!%p611_p3)
}
 0x144   :  { %377 = dma.vmem_to_hbm [thread:$0]  %s372_s4, 2048, %s771_s5, [#allocation5], %s623_s30, %s623_s30, %s624_s6  }
 0x145   :  { %619 = dma.done.wait [#allocation5], 2048  }
 0x146   :  { %620 = vsyncadd [#allocation5], 4294965248 }
 0x147   :  { %381 = vsyncpa [#allocation4], 1 }
 0x148   :  { %382 = vsyncpa [#allocation7], 1 }
 0x149   :  { %383 = vsyncpa [#allocation5], 1 }

</bundles_post_ra>
